<compile_context>
chip_gen: v7x
topology: tpu7x:2x2x1
jax: 0.10.0
libtpu: 0.0.40
codegen_flags: <defaults>
</compile_context>

<pallas_src>
import jax
import jax.numpy as jnp
from jax.experimental import pallas as pl
from jax.experimental.pallas import tpu as pltpu


def _make_kernel(agg_first_1, agg_first_2):
    """Build the fused GCNPredictor kernel (static per-layer structure)."""

    def kernel(
        # graph / features
        A_ref, S_ref, X_ref,
        # GCN layer 1 (fused weights)
        W1_ref, b1_ref, g1_ref, be1_ref,
        # GCN layer 2 (fused weights)
        W2_ref, b2_ref, g2_ref, be2_ref,
        # WeightAndSum readout
        wa_ref, ba_ref,
        # MLP predictor
        Wp1_ref, bp1_ref, gp_ref, bp_ref, Wp2_ref, bp2_ref,
        # packed output: [graph_feats | predictions | zero pad]
        out_ref,
    ):
        eps = jnp.float32(1e-5)
        A = A_ref[...]
        N = A.shape[0]
        inv_n = jnp.float32(1.0 / N)

        def batchnorm(x, gamma, beta, inv_count):
            # single-pass batch stats: sum and sum-of-squares together.
            s = jnp.sum(x, axis=0, keepdims=True)
            ss = jnp.sum(x * x, axis=0, keepdims=True)
            mu = s * inv_count
            var = jnp.maximum(ss * inv_count - mu * mu, 0.0)
            return (x - mu) * jax.lax.rsqrt(var + eps) * gamma + beta

        def gcn_layer(h, Wcat, bcat, gamma, beta, agg_first):
            H = gamma.shape[1]
            if agg_first:
                # conv = (A @ h) @ W ; res = h @ Wr
                # Wcat is block-diag [[W, 0], [0, Wr]] of shape (2F, 2H):
                # one MXU issue computes both branches at lane width 2H.
                agg_h = jnp.dot(A, h, preferred_element_type=jnp.float32)
                lhs = jnp.concatenate([agg_h, h], axis=1)          # (N, 2F)
                hw = jnp.dot(lhs, Wcat, preferred_element_type=jnp.float32)
                act = jnp.maximum(hw + bcat, 0.0)                  # (N, 2H)
                hnew = act[:, :H] + act[:, H:]
            else:
                # conv = A @ (h @ W) ; res = h @ Wr ; Wcat = [W | Wr] (F, 2H).
                hw = jnp.dot(h, Wcat, preferred_element_type=jnp.float32)
                xw = hw[:, :H]
                res_pre = hw[:, H:]
                agg = jnp.dot(A, xw, preferred_element_type=jnp.float32)
                conv = jnp.maximum(agg + bcat[:, :H], 0.0)
                res = jnp.maximum(res_pre + bcat[:, H:], 0.0)
                hnew = conv + res
            # dropout p=0 -> identity; BatchNorm1d (training-mode batch stats)
            return batchnorm(hnew, gamma, beta, inv_n)

        h1 = gcn_layer(X_ref[...], W1_ref[...], b1_ref[...],
                       g1_ref[...], be1_ref[...], agg_first_1)
        h2 = gcn_layer(h1, W2_ref[...], b2_ref[...],
                       g2_ref[...], be2_ref[...], agg_first_2)

        # ---- WeightedSumAndMax readout ----
        H = h2.shape[1]
        S = S_ref[...]                                             # (B, N)
        B = S.shape[0]
        # atom weights without a lane-1 matmul: VPU multiply + XLU lane reduce
        w = jax.nn.sigmoid(
            jnp.sum(h2 * wa_ref[...], axis=-1, keepdims=True) + ba_ref[...])
        h_sum = jnp.dot(S, w * h2, preferred_element_type=jnp.float32)  # (B, H)
        # per-graph max: single broadcast masked reduction (B, N, H) -> (B, H)
        neg = jnp.float32(-1e30)
        masked = jnp.where(S[:, :, None] > 0.5, h2[None, :, :], neg)
        h_max = jnp.max(masked, axis=1)
        gf = jnp.concatenate([h_sum, h_max], axis=1)               # (B, 2H)

        # ---- MLP predictor: Dropout(0) -> Linear -> ReLU -> BN -> Linear ----
        z = jnp.maximum(
            jnp.dot(gf, Wp1_ref[...], preferred_element_type=jnp.float32)
            + bp1_ref[...], 0.0)
        z = batchnorm(z, gp_ref[...], bp_ref[...], jnp.float32(1.0 / B))
        pred = (jnp.dot(z, Wp2_ref[...], preferred_element_type=jnp.float32)
                + bp2_ref[...])

        # ---- lane-dense packed output store ----
        n_tasks = pred.shape[1]
        pad = out_ref.shape[1] - (2 * H + n_tasks)
        pieces = [gf, pred]
        if pad > 0:
            pieces.append(jnp.zeros((B, pad), jnp.float32))
        out_ref[...] = jnp.concatenate(pieces, axis=1)

    return kernel


def gcn_predictor(A, S, feats, params):
    """Run the whole GCNPredictor forward once; returns (graph_feats, preds)."""
    N, F = feats.shape
    B = S.shape[0]
    H1 = params["W1"].shape[1]
    H2 = params["W2"].shape[1]
    n_tasks = params["Wp2"].shape[1]

    # Aggregate-before-weight when the input width is narrower than the output.
    agg_first_1 = F < H1
    agg_first_2 = H1 < H2

    def fuse(W, Wr, agg_first):
        if agg_first:
            fin, hout = W.shape
            Wblk = jnp.zeros((2 * fin, 2 * hout), jnp.float32)
            Wblk = Wblk.at[:fin, :hout].set(W)
            Wblk = Wblk.at[fin:, hout:].set(Wr)
            return Wblk
        return jnp.concatenate([W, Wr], axis=1)

    W1f = fuse(params["W1"], params["Wr1"], agg_first_1)
    b1f = jnp.concatenate([params["b1"], params["br1"]], axis=1)
    W2f = fuse(params["W2"], params["Wr2"], agg_first_2)
    b2f = jnp.concatenate([params["b2"], params["br2"]], axis=1)
    wa_row = params["wa"].reshape(1, H2)

    # pad the packed output to a lane-dense width (multiple of 128)
    out_width = max(128, pl.cdiv(2 * H2 + n_tasks, 128) * 128)

    inputs = [
        A, S, feats,
        W1f, b1f, params["g1"], params["be1"],
        W2f, b2f, params["g2"], params["be2"],
        wa_row, params["ba"],
        params["Wp1"], params["bp1"], params["gp"], params["bp"],
        params["Wp2"], params["bp2"],
    ]

    slab = pl.pallas_call(
        _make_kernel(agg_first_1, agg_first_2),
        out_shape=jax.ShapeDtypeStruct((B, out_width), jnp.float32),
        in_specs=[pl.BlockSpec(memory_space=pltpu.MemorySpace.VMEM)] * len(inputs),
        out_specs=pl.BlockSpec(memory_space=pltpu.MemorySpace.VMEM),
    )(*inputs)

    graph_feats = slab[:, : 2 * H2]
    preds = slab[:, 2 * H2: 2 * H2 + n_tasks]
    return graph_feats, preds


def gcn_predictor_forward(A, S, feats, params, model_use="b"):
    """Matches GCNPredictor.forward: 'a' -> graph features, else -> logits."""
    graph_feats, preds = gcn_predictor(A, S, feats, params)
    return graph_feats if model_use == "a" else preds


def reference_forward(A, S, feats, params):
    """Pure-JAX reference of the original (unfused) forward pass."""
    eps = 1e-5

    def layer(h, W, b, Wr, br, g, be):
        conv = jnp.maximum(A @ (h @ W) + b, 0.0)
        res = jnp.maximum(h @ Wr + br, 0.0)
        x = conv + res
        mu = jnp.mean(x, axis=0, keepdims=True)
        var = jnp.mean((x - mu) ** 2, axis=0, keepdims=True)
        return (x - mu) / jnp.sqrt(var + eps) * g + be

    h1 = layer(feats, params["W1"], params["b1"], params["Wr1"],
               params["br1"], params["g1"], params["be1"])
    h2 = layer(h1, params["W2"], params["b2"], params["Wr2"],
               params["br2"], params["g2"], params["be2"])
    w = jax.nn.sigmoid(h2 @ params["wa"] + params["ba"])
    h_sum = S @ (w * h2)
    h_max = jnp.max(jnp.where(S[:, :, None] > 0.5, h2[None], -1e30), axis=1)
    gf = jnp.concatenate([h_sum, h_max], axis=1)
    z = jnp.maximum(gf @ params["Wp1"] + params["bp1"], 0.0)
    mu = jnp.mean(z, axis=0, keepdims=True)
    var = jnp.mean((z - mu) ** 2, axis=0, keepdims=True)
    z = (z - mu) / jnp.sqrt(var + eps) * params["gp"] + params["bp"]
    pred = z @ params["Wp2"] + params["bp2"]
    return gf, pred


def make_params(key, in_feats, hidden, pred_hidden, n_tasks):
    ks = list(jax.random.split(key, 20))

    def nrm(k, shape, scale=0.1):
        return (scale * jax.random.normal(k, shape)).astype(jnp.float32)

    H1, H2 = hidden
    return {
        # GCN layer 1
        "W1": nrm(ks[0], (in_feats, H1)),
        "b1": nrm(ks[1], (1, H1), 0.05),
        "Wr1": nrm(ks[2], (in_feats, H1)),
        "br1": nrm(ks[3], (1, H1), 0.05),
        "g1": 1.0 + nrm(ks[4], (1, H1), 0.05),
        "be1": nrm(ks[5], (1, H1), 0.05),
        # GCN layer 2
        "W2": nrm(ks[6], (H1, H2)),
        "b2": nrm(ks[7], (1, H2), 0.05),
        "Wr2": nrm(ks[8], (H1, H2)),
        "br2": nrm(ks[9], (1, H2), 0.05),
        "g2": 1.0 + nrm(ks[10], (1, H2), 0.05),
        "be2": nrm(ks[11], (1, H2), 0.05),
        # WeightAndSum
        "wa": nrm(ks[12], (H2, 1)),
        "ba": nrm(ks[13], (1, 1), 0.05),
        # MLP predictor
        "Wp1": nrm(ks[14], (2 * H2, pred_hidden)),
        "bp1": nrm(ks[15], (1, pred_hidden), 0.05),
        "gp": 1.0 + nrm(ks[16], (1, pred_hidden), 0.05),
        "bp": nrm(ks[17], (1, pred_hidden), 0.05),
        "Wp2": nrm(ks[18], (pred_hidden, n_tasks)),
        "bp2": nrm(ks[19], (1, n_tasks), 0.05),
    }


if __name__ == "__main__":
    B = 2          # graphs in the batch
    N_PER = 8      # nodes per graph
    N = B * N_PER  # total nodes
    IN_FEATS = 16
    HIDDEN = (32, 32)
    PRED_HIDDEN = 32
    N_TASKS = 1

    key = jax.random.PRNGKey(0)
    k_feat, k_adj, k_par = jax.random.split(key, 3)

    # node features (N, F)
    feats = jax.random.normal(k_feat, (N, IN_FEATS), dtype=jnp.float32)

    # block-diagonal adjacency with self-loops
    adj_blocks = (jax.random.uniform(k_adj, (B, N_PER, N_PER)) < 0.4).astype(jnp.float32)
    A = jnp.zeros((N, N), dtype=jnp.float32)
    for b in range(B):
        blk = jnp.minimum(adj_blocks[b] + jnp.eye(N_PER, dtype=jnp.float32), 1.0)
        A = A.at[b * N_PER:(b + 1) * N_PER, b * N_PER:(b + 1) * N_PER].set(blk)

    # graph membership matrix (B, N)
    node_graph = jnp.arange(N) // N_PER
    S = (node_graph[None, :] == jnp.arange(B)[:, None]).astype(jnp.float32)

    params = make_params(k_par, IN_FEATS, HIDDEN, PRED_HIDDEN, N_TASKS)

    # Single kernel invocation produces BOTH outputs (model_use 'a' and 'b').
    graph_feats, preds = gcn_predictor(A, S, feats, params)
    jax.block_until_ready(graph_feats)
    jax.block_until_ready(preds)

    assert graph_feats.shape == (B, 2 * HIDDEN[-1])
    assert preds.shape == (B, N_TASKS)

    # correctness check against the pure-JAX (unfused) reference
    gf_ref, pred_ref = reference_forward(A, S, feats, params)
    assert jnp.allclose(graph_feats, gf_ref, rtol=2e-3, atol=2e-3)
    assert jnp.allclose(preds, pred_ref, rtol=2e-3, atol=2e-3)

    print("KERNEL_OK")
</pallas_src>

<mosaic_0001>
module attributes {stable_mosaic.version = 11 : i64} {
  func.func @kernel(%arg0: memref<16x16xf32, #tpu.memory_space<vmem>>, %arg1: memref<2x16xf32, #tpu.memory_space<vmem>>, %arg2: memref<16x16xf32, #tpu.memory_space<vmem>>, %arg3: memref<32x64xf32, #tpu.memory_space<vmem>>, %arg4: memref<1x64xf32, #tpu.memory_space<vmem>>, %arg5: memref<1x32xf32, #tpu.memory_space<vmem>>, %arg6: memref<1x32xf32, #tpu.memory_space<vmem>>, %arg7: memref<32x64xf32, #tpu.memory_space<vmem>>, %arg8: memref<1x64xf32, #tpu.memory_space<vmem>>, %arg9: memref<1x32xf32, #tpu.memory_space<vmem>>, %arg10: memref<1x32xf32, #tpu.memory_space<vmem>>, %arg11: memref<1x32xf32, #tpu.memory_space<vmem>>, %arg12: memref<1x1xf32, #tpu.memory_space<vmem>>, %arg13: memref<64x32xf32, #tpu.memory_space<vmem>>, %arg14: memref<1x32xf32, #tpu.memory_space<vmem>>, %arg15: memref<1x32xf32, #tpu.memory_space<vmem>>, %arg16: memref<1x32xf32, #tpu.memory_space<vmem>>, %arg17: memref<32x1xf32, #tpu.memory_space<vmem>>, %arg18: memref<1x1xf32, #tpu.memory_space<vmem>>, %arg19: memref<2x128xf32, #tpu.memory_space<vmem>>) attributes {dimension_semantics = [], scalar_prefetch = 0 : i64, scratch_operands = 0 : i64, tpu.core_type = #tpu.core_type<tc>} {
    %c0 = arith.constant 0 : index
    %c0_0 = arith.constant 0 : index
    %0 = vector.load %arg0[%c0, %c0_0] : memref<16x16xf32, #tpu.memory_space<vmem>>, vector<16x16xf32>
    %c0_1 = arith.constant 0 : index
    %c0_2 = arith.constant 0 : index
    %1 = vector.load %arg2[%c0_1, %c0_2] : memref<16x16xf32, #tpu.memory_space<vmem>>, vector<16x16xf32>
    %c0_3 = arith.constant 0 : index
    %c0_4 = arith.constant 0 : index
    %2 = vector.load %arg3[%c0_3, %c0_4] : memref<32x64xf32, #tpu.memory_space<vmem>>, vector<32x64xf32>
    %c0_5 = arith.constant 0 : index
    %c0_6 = arith.constant 0 : index
    %3 = vector.load %arg4[%c0_5, %c0_6] : memref<1x64xf32, #tpu.memory_space<vmem>>, vector<1x64xf32>
    %c0_7 = arith.constant 0 : index
    %c0_8 = arith.constant 0 : index
    %4 = vector.load %arg5[%c0_7, %c0_8] : memref<1x32xf32, #tpu.memory_space<vmem>>, vector<1x32xf32>
    %c0_9 = arith.constant 0 : index
    %c0_10 = arith.constant 0 : index
    %5 = vector.load %arg6[%c0_9, %c0_10] : memref<1x32xf32, #tpu.memory_space<vmem>>, vector<1x32xf32>
    %cst = arith.constant dense<0.000000e+00> : vector<16x16xf32>
    %6 = tpu.matmul %0, %1, %cst {dimension_numbers = #tpu.dot_dimension_numbers<[1], [0], [0], [1], [0, 0, 1, 1], [], []>} : vector<16x16xf32>, vector<16x16xf32>, vector<16x16xf32> -> vector<16x16xf32>
    %7 = tpu.concatenate %6, %1 in 1 : vector<16x16xf32>, vector<16x16xf32> -> vector<16x32xf32>
    %cst_11 = arith.constant dense<0.000000e+00> : vector<16x64xf32>
    %8 = tpu.matmul %7, %2, %cst_11 {dimension_numbers = #tpu.dot_dimension_numbers<[1], [0], [0], [1], [0, 0, 1, 1], [], []>} : vector<16x32xf32>, vector<32x64xf32>, vector<16x64xf32> -> vector<16x64xf32>
    %9 = vector.broadcast %3 : vector<1x64xf32> to vector<16x64xf32>
    %10 = arith.addf %8, %9 : vector<16x64xf32>
    %cst_12 = arith.constant 0.000000e+00 : f32
    %11 = vector.broadcast %cst_12 : f32 to vector<16x64xf32>
    %12 = arith.maximumf %10, %11 : vector<16x64xf32>
    %13 = vector.extract_strided_slice %12 {offsets = [0, 0], sizes = [16, 32], strides = [1, 1]} : vector<16x64xf32> to vector<16x32xf32>
    %14 = vector.extract_strided_slice %12 {offsets = [0, 32], sizes = [16, 32], strides = [1, 1]} : vector<16x64xf32> to vector<16x32xf32>
    %15 = arith.addf %13, %14 : vector<16x32xf32>
    %cst_13 = arith.constant dense<0.000000e+00> : vector<32xf32>
    %16 = vector.multi_reduction <add>, %15, %cst_13 [0] : vector<16x32xf32> to vector<32xf32>
    %17 = vector.shape_cast %16 : vector<32xf32> to vector<1x32xf32>
    %18 = arith.mulf %15, %15 : vector<16x32xf32>
    %cst_14 = arith.constant dense<0.000000e+00> : vector<32xf32>
    %19 = vector.multi_reduction <add>, %18, %cst_14 [0] : vector<16x32xf32> to vector<32xf32>
    %20 = vector.shape_cast %19 : vector<32xf32> to vector<1x32xf32>
    %cst_15 = arith.constant 6.250000e-02 : f32
    %21 = vector.broadcast %cst_15 : f32 to vector<1x32xf32>
    %22 = arith.mulf %17, %21 : vector<1x32xf32>
    %cst_16 = arith.constant 6.250000e-02 : f32
    %23 = vector.broadcast %cst_16 : f32 to vector<1x32xf32>
    %24 = arith.mulf %20, %23 : vector<1x32xf32>
    %25 = arith.mulf %22, %22 : vector<1x32xf32>
    %26 = arith.subf %24, %25 : vector<1x32xf32>
    %cst_17 = arith.constant 0.000000e+00 : f32
    %27 = vector.broadcast %cst_17 : f32 to vector<1x32xf32>
    %28 = arith.maximumf %26, %27 : vector<1x32xf32>
    %29 = vector.broadcast %22 : vector<1x32xf32> to vector<16x32xf32>
    %30 = arith.subf %15, %29 : vector<16x32xf32>
    %cst_18 = arith.constant 9.99999974E-6 : f32
    %31 = vector.broadcast %cst_18 : f32 to vector<1x32xf32>
    %32 = arith.addf %28, %31 : vector<1x32xf32>
    %33 = math.rsqrt %32 : vector<1x32xf32>
    %34 = vector.broadcast %33 : vector<1x32xf32> to vector<16x32xf32>
    %35 = arith.mulf %30, %34 : vector<16x32xf32>
    %36 = vector.broadcast %4 : vector<1x32xf32> to vector<16x32xf32>
    %37 = arith.mulf %35, %36 : vector<16x32xf32>
    %38 = vector.broadcast %5 : vector<1x32xf32> to vector<16x32xf32>
    %39 = arith.addf %37, %38 : vector<16x32xf32>
    %c0_19 = arith.constant 0 : index
    %c0_20 = arith.constant 0 : index
    %40 = vector.load %arg7[%c0_19, %c0_20] : memref<32x64xf32, #tpu.memory_space<vmem>>, vector<32x64xf32>
    %c0_21 = arith.constant 0 : index
    %c0_22 = arith.constant 0 : index
    %41 = vector.load %arg8[%c0_21, %c0_22] : memref<1x64xf32, #tpu.memory_space<vmem>>, vector<1x64xf32>
    %c0_23 = arith.constant 0 : index
    %c0_24 = arith.constant 0 : index
    %42 = vector.load %arg9[%c0_23, %c0_24] : memref<1x32xf32, #tpu.memory_space<vmem>>, vector<1x32xf32>
    %c0_25 = arith.constant 0 : index
    %c0_26 = arith.constant 0 : index
    %43 = vector.load %arg10[%c0_25, %c0_26] : memref<1x32xf32, #tpu.memory_space<vmem>>, vector<1x32xf32>
    %cst_27 = arith.constant dense<0.000000e+00> : vector<16x64xf32>
    %44 = tpu.matmul %39, %40, %cst_27 {dimension_numbers = #tpu.dot_dimension_numbers<[1], [0], [0], [1], [0, 0, 1, 1], [], []>} : vector<16x32xf32>, vector<32x64xf32>, vector<16x64xf32> -> vector<16x64xf32>
    %45 = vector.extract_strided_slice %44 {offsets = [0, 0], sizes = [16, 32], strides = [1, 1]} : vector<16x64xf32> to vector<16x32xf32>
    %46 = vector.extract_strided_slice %44 {offsets = [0, 32], sizes = [16, 32], strides = [1, 1]} : vector<16x64xf32> to vector<16x32xf32>
    %cst_28 = arith.constant dense<0.000000e+00> : vector<16x32xf32>
    %47 = tpu.matmul %0, %45, %cst_28 {dimension_numbers = #tpu.dot_dimension_numbers<[1], [0], [0], [1], [0, 0, 1, 1], [], []>} : vector<16x16xf32>, vector<16x32xf32>, vector<16x32xf32> -> vector<16x32xf32>
    %48 = vector.extract_strided_slice %41 {offsets = [0, 0], sizes = [1, 32], strides = [1, 1]} : vector<1x64xf32> to vector<1x32xf32>
    %49 = vector.broadcast %48 : vector<1x32xf32> to vector<16x32xf32>
    %50 = arith.addf %47, %49 : vector<16x32xf32>
    %cst_29 = arith.constant 0.000000e+00 : f32
    %51 = vector.broadcast %cst_29 : f32 to vector<16x32xf32>
    %52 = arith.maximumf %50, %51 : vector<16x32xf32>
    %53 = vector.extract_strided_slice %41 {offsets = [0, 32], sizes = [1, 32], strides = [1, 1]} : vector<1x64xf32> to vector<1x32xf32>
    %54 = vector.broadcast %53 : vector<1x32xf32> to vector<16x32xf32>
    %55 = arith.addf %46, %54 : vector<16x32xf32>
    %cst_30 = arith.constant 0.000000e+00 : f32
    %56 = vector.broadcast %cst_30 : f32 to vector<16x32xf32>
    %57 = arith.maximumf %55, %56 : vector<16x32xf32>
    %58 = arith.addf %52, %57 : vector<16x32xf32>
    %cst_31 = arith.constant dense<0.000000e+00> : vector<32xf32>
    %59 = vector.multi_reduction <add>, %58, %cst_31 [0] : vector<16x32xf32> to vector<32xf32>
    %60 = vector.shape_cast %59 : vector<32xf32> to vector<1x32xf32>
    %61 = arith.mulf %58, %58 : vector<16x32xf32>
    %cst_32 = arith.constant dense<0.000000e+00> : vector<32xf32>
    %62 = vector.multi_reduction <add>, %61, %cst_32 [0] : vector<16x32xf32> to vector<32xf32>
    %63 = vector.shape_cast %62 : vector<32xf32> to vector<1x32xf32>
    %cst_33 = arith.constant 6.250000e-02 : f32
    %64 = vector.broadcast %cst_33 : f32 to vector<1x32xf32>
    %65 = arith.mulf %60, %64 : vector<1x32xf32>
    %cst_34 = arith.constant 6.250000e-02 : f32
    %66 = vector.broadcast %cst_34 : f32 to vector<1x32xf32>
    %67 = arith.mulf %63, %66 : vector<1x32xf32>
    %68 = arith.mulf %65, %65 : vector<1x32xf32>
    %69 = arith.subf %67, %68 : vector<1x32xf32>
    %cst_35 = arith.constant 0.000000e+00 : f32
    %70 = vector.broadcast %cst_35 : f32 to vector<1x32xf32>
    %71 = arith.maximumf %69, %70 : vector<1x32xf32>
    %72 = vector.broadcast %65 : vector<1x32xf32> to vector<16x32xf32>
    %73 = arith.subf %58, %72 : vector<16x32xf32>
    %cst_36 = arith.constant 9.99999974E-6 : f32
    %74 = vector.broadcast %cst_36 : f32 to vector<1x32xf32>
    %75 = arith.addf %71, %74 : vector<1x32xf32>
    %76 = math.rsqrt %75 : vector<1x32xf32>
    %77 = vector.broadcast %76 : vector<1x32xf32> to vector<16x32xf32>
    %78 = arith.mulf %73, %77 : vector<16x32xf32>
    %79 = vector.broadcast %42 : vector<1x32xf32> to vector<16x32xf32>
    %80 = arith.mulf %78, %79 : vector<16x32xf32>
    %81 = vector.broadcast %43 : vector<1x32xf32> to vector<16x32xf32>
    %82 = arith.addf %80, %81 : vector<16x32xf32>
    %c0_37 = arith.constant 0 : index
    %c0_38 = arith.constant 0 : index
    %83 = vector.load %arg1[%c0_37, %c0_38] : memref<2x16xf32, #tpu.memory_space<vmem>>, vector<2x16xf32>
    %c0_39 = arith.constant 0 : index
    %c0_40 = arith.constant 0 : index
    %84 = vector.load %arg11[%c0_39, %c0_40] : memref<1x32xf32, #tpu.memory_space<vmem>>, vector<1x32xf32>
    %85 = vector.broadcast %84 : vector<1x32xf32> to vector<16x32xf32>
    %86 = arith.mulf %82, %85 : vector<16x32xf32>
    %cst_41 = arith.constant dense<0.000000e+00> : vector<16xf32>
    %87 = vector.multi_reduction <add>, %86, %cst_41 [1] : vector<16x32xf32> to vector<16xf32>
    %88 = vector.shape_cast %87 : vector<16xf32> to vector<16x1xf32>
    %c0_42 = arith.constant 0 : index
    %c0_43 = arith.constant 0 : index
    %89 = vector.load %arg12[%c0_42, %c0_43] : memref<1x1xf32, #tpu.memory_space<vmem>>, vector<1x1xf32>
    %90 = vector.broadcast %89 : vector<1x1xf32> to vector<16x1xf32>
    %91 = arith.addf %88, %90 : vector<16x1xf32>
    %92 = arith.negf %91 : vector<16x1xf32>
    %93 = math.exp %92 : vector<16x1xf32>
    %cst_44 = arith.constant 1.000000e+00 : f32
    %94 = vector.broadcast %cst_44 : f32 to vector<16x1xf32>
    %95 = arith.addf %94, %93 : vector<16x1xf32>
    %96 = arith.divf %94, %95 : vector<16x1xf32>
    %97 = vector.broadcast %96 : vector<16x1xf32> to vector<16x32xf32>
    %98 = arith.mulf %97, %82 : vector<16x32xf32>
    %cst_45 = arith.constant dense<0.000000e+00> : vector<2x32xf32>
    %99 = tpu.matmul %83, %98, %cst_45 {dimension_numbers = #tpu.dot_dimension_numbers<[1], [0], [0], [1], [0, 0, 1, 1], [], []>} : vector<2x16xf32>, vector<16x32xf32>, vector<2x32xf32> -> vector<2x32xf32>
    %100 = vector.shape_cast %83 : vector<2x16xf32> to vector<2x16x1xf32>
    %cst_46 = arith.constant 5.000000e-01 : f32
    %101 = vector.broadcast %cst_46 : f32 to vector<2x16x1xf32>
    %102 = arith.cmpf ogt, %100, %101 : vector<2x16x1xf32>
    %103 = vector.shape_cast %82 : vector<16x32xf32> to vector<1x16x32xf32>
    %cst_47 = arith.constant -1.000000e+30 : f32
    %104 = vector.shape_cast %102 : vector<2x16x1xi1> to vector<2x16x1xi1>
    %105 = vector.broadcast %104 : vector<2x16x1xi1> to vector<2x16x32xi1>
    %106 = vector.shape_cast %103 : vector<1x16x32xf32> to vector<1x16x32xf32>
    %107 = vector.broadcast %106 : vector<1x16x32xf32> to vector<2x16x32xf32>
    %108 = vector.broadcast %cst_47 : f32 to vector<2x16x32xf32>
    %109 = arith.select %105, %107, %108 : vector<2x16x32xi1>, vector<2x16x32xf32>
    %cst_48 = arith.constant dense<0xFF800000> : vector<2x32xf32>
    %110 = vector.multi_reduction <maximumf>, %109, %cst_48 [1] : vector<2x16x32xf32> to vector<2x32xf32>
    %111 = tpu.concatenate %99, %110 in 1 : vector<2x32xf32>, vector<2x32xf32> -> vector<2x64xf32>
    %c0_49 = arith.constant 0 : index
    %c0_50 = arith.constant 0 : index
    %112 = vector.load %arg13[%c0_49, %c0_50] : memref<64x32xf32, #tpu.memory_space<vmem>>, vector<64x32xf32>
    %cst_51 = arith.constant dense<0.000000e+00> : vector<2x32xf32>
    %113 = tpu.matmul %111, %112, %cst_51 {dimension_numbers = #tpu.dot_dimension_numbers<[1], [0], [0], [1], [0, 0, 1, 1], [], []>} : vector<2x64xf32>, vector<64x32xf32>, vector<2x32xf32> -> vector<2x32xf32>
    %c0_52 = arith.constant 0 : index
    %c0_53 = arith.constant 0 : index
    %114 = vector.load %arg14[%c0_52, %c0_53] : memref<1x32xf32, #tpu.memory_space<vmem>>, vector<1x32xf32>
    %115 = vector.broadcast %114 : vector<1x32xf32> to vector<2x32xf32>
    %116 = arith.addf %113, %115 : vector<2x32xf32>
    %cst_54 = arith.constant 0.000000e+00 : f32
    %117 = vector.broadcast %cst_54 : f32 to vector<2x32xf32>
    %118 = arith.maximumf %116, %117 : vector<2x32xf32>
    %c0_55 = arith.constant 0 : index
    %c0_56 = arith.constant 0 : index
    %119 = vector.load %arg15[%c0_55, %c0_56] : memref<1x32xf32, #tpu.memory_space<vmem>>, vector<1x32xf32>
    %c0_57 = arith.constant 0 : index
    %c0_58 = arith.constant 0 : index
    %120 = vector.load %arg16[%c0_57, %c0_58] : memref<1x32xf32, #tpu.memory_space<vmem>>, vector<1x32xf32>
    %cst_59 = arith.constant dense<0.000000e+00> : vector<32xf32>
    %121 = vector.multi_reduction <add>, %118, %cst_59 [0] : vector<2x32xf32> to vector<32xf32>
    %122 = vector.shape_cast %121 : vector<32xf32> to vector<1x32xf32>
    %123 = arith.mulf %118, %118 : vector<2x32xf32>
    %cst_60 = arith.constant dense<0.000000e+00> : vector<32xf32>
    %124 = vector.multi_reduction <add>, %123, %cst_60 [0] : vector<2x32xf32> to vector<32xf32>
    %125 = vector.shape_cast %124 : vector<32xf32> to vector<1x32xf32>
    %cst_61 = arith.constant 5.000000e-01 : f32
    %126 = vector.broadcast %cst_61 : f32 to vector<1x32xf32>
    %127 = arith.mulf %122, %126 : vector<1x32xf32>
    %cst_62 = arith.constant 5.000000e-01 : f32
    %128 = vector.broadcast %cst_62 : f32 to vector<1x32xf32>
    %129 = arith.mulf %125, %128 : vector<1x32xf32>
    %130 = arith.mulf %127, %127 : vector<1x32xf32>
    %131 = arith.subf %129, %130 : vector<1x32xf32>
    %cst_63 = arith.constant 0.000000e+00 : f32
    %132 = vector.broadcast %cst_63 : f32 to vector<1x32xf32>
    %133 = arith.maximumf %131, %132 : vector<1x32xf32>
    %134 = vector.broadcast %127 : vector<1x32xf32> to vector<2x32xf32>
    %135 = arith.subf %118, %134 : vector<2x32xf32>
    %cst_64 = arith.constant 9.99999974E-6 : f32
    %136 = vector.broadcast %cst_64 : f32 to vector<1x32xf32>
    %137 = arith.addf %133, %136 : vector<1x32xf32>
    %138 = math.rsqrt %137 : vector<1x32xf32>
    %139 = vector.broadcast %138 : vector<1x32xf32> to vector<2x32xf32>
    %140 = arith.mulf %135, %139 : vector<2x32xf32>
    %141 = vector.broadcast %119 : vector<1x32xf32> to vector<2x32xf32>
    %142 = arith.mulf %140, %141 : vector<2x32xf32>
    %143 = vector.broadcast %120 : vector<1x32xf32> to vector<2x32xf32>
    %144 = arith.addf %142, %143 : vector<2x32xf32>
    %c0_65 = arith.constant 0 : index
    %c0_66 = arith.constant 0 : index
    %145 = vector.load %arg17[%c0_65, %c0_66] : memref<32x1xf32, #tpu.memory_space<vmem>>, vector<32x1xf32>
    %cst_67 = arith.constant dense<0.000000e+00> : vector<2x1xf32>
    %146 = tpu.matmul %144, %145, %cst_67 {dimension_numbers = #tpu.dot_dimension_numbers<[1], [0], [0], [1], [0, 0, 1, 1], [], []>} : vector<2x32xf32>, vector<32x1xf32>, vector<2x1xf32> -> vector<2x1xf32>
    %c0_68 = arith.constant 0 : index
    %c0_69 = arith.constant 0 : index
    %147 = vector.load %arg18[%c0_68, %c0_69] : memref<1x1xf32, #tpu.memory_space<vmem>>, vector<1x1xf32>
    %148 = vector.broadcast %147 : vector<1x1xf32> to vector<2x1xf32>
    %149 = arith.addf %146, %148 : vector<2x1xf32>
    %cst_70 = arith.constant 0.000000e+00 : f32
    %150 = vector.broadcast %cst_70 : f32 to vector<2x63xf32>
    %151 = tpu.concatenate %111, %149, %150 in 1 : vector<2x64xf32>, vector<2x1xf32>, vector<2x63xf32> -> vector<2x128xf32>
    %c0_71 = arith.constant 0 : index
    %c0_72 = arith.constant 0 : index
    %152 = vector.load %arg19[%c0_71, %c0_72] : memref<2x128xf32, #tpu.memory_space<vmem>>, vector<2x128xf32>
    tpu.vector_store %arg19[%c0_71, %c0_72], %151 {strides = array<i32>} : memref<2x128xf32, #tpu.memory_space<vmem>>, vector<2x128xf32>,
    return
  }
}

</mosaic_0001>

<bundles_post_ra>
// kernel: tpu_custom_call.1
= control target key start
LH: loop header
LB: loop body
LE: loop exit
PB: predicated region body
PF: predicated region fallthrough
CT: control target
= control target key end

     0   :  { %s1492_s0 = inlined_call_operand.vmem [shape: f32[16,16], index: 0, kind: input, shape index: {}]   ;;  %s1493_s1 = inlined_call_operand.vmem [shape: f32[2,16], index: 1, kind: input, shape index: {}]   ;;  %s1494_s2 = inlined_call_operand.vmem [shape: f32[16,16], index: 2, kind: input, shape index: {}]   ;;  %s1495_s3 = inlined_call_operand.vmem [shape: f32[32,64], index: 3, kind: input, shape index: {}]   ;;  %s1496_s4 = inlined_call_operand.vmem [shape: f32[1,64], index: 4, kind: input, shape index: {}]   ;;  %s1497_s5 = inlined_call_operand.vmem [shape: f32[1,32], index: 5, kind: input, shape index: {}]   ;;  %s1498_s6 = inlined_call_operand.vmem [shape: f32[1,32], index: 6, kind: input, shape index: {}]   ;;  %s1499_s7 = inlined_call_operand.vmem [shape: f32[32,64], index: 7, kind: input, shape index: {}]   ;;  %s1500_s8 = inlined_call_operand.vmem [shape: f32[1,64], index: 8, kind: input, shape index: {}]   ;;  %s1501_s9 = inlined_call_operand.vmem [shape: f32[1,32], index: 9, kind: input, shape index: {}]   ;;  %s1502_s10 = inlined_call_operand.vmem [shape: f32[1,32], index: 10, kind: input, shape index: {}]   ;;  %s1503_s11 = inlined_call_operand.vmem [shape: f32[1,32], index: 11, kind: input, shape index: {}]   ;;  %s1504_s12 = inlined_call_operand.<no memory space> [shape: f32[1,1], index: 12, kind: input, shape index: {}]   ;;  %s1505_s13 = inlined_call_operand.vmem [shape: f32[64,32], index: 13, kind: input, shape index: {}]   ;;  %s1506_s14 = inlined_call_operand.vmem [shape: f32[1,32], index: 14, kind: input, shape index: {}]   ;;  %s1507_s15 = inlined_call_operand.vmem [shape: f32[1,32], index: 15, kind: input, shape index: {}]   ;;  %s1508_s16 = inlined_call_operand.vmem [shape: f32[1,32], index: 16, kind: input, shape index: {}]   ;;  %s1509_s17 = inlined_call_operand.vmem [shape: f32[32,1], index: 17, kind: input, shape index: {}]   ;;  %s1510_s19 = inlined_call_operand.hbm [shape: f32[2,128], index: 19, kind: output, shape index: {}]   ;;  %s1511_s18 = inlined_call_operand.<no memory space> [shape: f32[1,1], index: 18, kind: input, shape index: {}]  }
   0x1   :  { %1515 = sst [smem:[#allocation7_spill]] %s1492_s0  ;;  %v24_v0 = vstv %s1504_s12  ;;  %v26_v1 = vstv %s1511_s18 }
   0x2   :  { %1516 = sst [smem:[#allocation8_spill]] %s1493_s1  ;;  %25 = vst [vmem:[#allocation2] sm:$0x1] %v24_v0  ;;  %27 = vst [vmem:[#allocation3] sm:$0x1] %v26_v1 }
   0x3   :  { %1517 = sst [smem:[#allocation9_spill]] %s1494_s2 }
   0x4   :  { %1518 = sst [smem:[#allocation10_spill]] %s1495_s3 }
   0x5   :  { %s1519_s2 = sld [smem:[#allocation9_spill]]  ;;  %s1520_s26 = sld [smem:[#allocation7_spill]]  ;;  %vm78_vm0 = vcmask 130048  }
   0x6   :  { %s1201_s12 = smov 16   ;;  %s1521_s28 = sld [smem:[#allocation10_spill]] }
   0xb   :  { %v69_v2 = vld [vmem:[%s1519_s2] sm:$0xff]  ;;  %v70_v3 = vld [vmem:[%s1519_s2 + $0x8] sm:$0xff] }
   0xc   :  { %v67_v4 = vld [vmem:[%s1520_s26] sm:$0xff]  ;;  %v1107_v5 = vpack.c.bf16 %v70_v3, %v69_v2  ;;  %162 = vrot.lane.b32.xlu0 %v69_v2, %s1201_s12  ;;  %v72_v7 = vld [vmem:[%s1521_s28 + $0x8] sm:$0xff]  ;;  %v73_v9 = vld [vmem:[%s1521_s28 + $0x10] sm:$0xff] }
   0xd   :  { %1038 = vmatprep.mubr.msk.f32.mxu0 %vm78_vm0, %v67_v4  ;;  %v71_v6 = vld [vmem:[%s1521_s28] sm:$0xff]  ;;  %v74_v10 = vld [vmem:[%s1521_s28 + $0x18] sm:$0xff] }
   0xe   :  { %v1111_v8 = vpack.c.bf16 %v72_v7, %v71_v6 }
   0xf   :  { %28 = vsyncpa [#allocation5], 0  ;;  %1108 = vmatprep.subr.bf16.mxu0 %v1107_v5  ;;  %v1115_v11 = vpack.c.bf16 %v74_v10, %v73_v9  ;;  %v1341_v12 = vld [vmem:[%s1520_s26 + $0x8] sm:$0xff]  ;;  %vm176_vm1 = vcmask 261120   ;;  %v974_v19 = vld [vmem:[%s1496_s4] ss:$0 sm:$0xff] }
  0x10   :  { %1110 = vmatpush3.bf16.msra.mxu0 %v1107_v5  ;;  %1112 = vmatprep.subr.bf16.mxu1 %v1111_v8  ;;  %s1202_s25 = smov 96   ;;  %v317_v26 = vld [vmem:[%s1499_s7] sm:$0xff]  ;;  %v318_v27 = vld [vmem:[%s1499_s7 + $0x8] sm:$0xff]  ;;  %v319_v29 = vld [vmem:[%s1499_s7 + $0x10] sm:$0xff]  ;;  %vm1205_vm2 = vmmov 0   ;;  %vm729_vm7 = vcmask 1041409  }
  0x11   :  { %164 = vrot.lane.b32.xlu0 %v70_v3, %s1201_s12  ;;  %1114 = vmatpush3.bf16.msra.mxu1 %v1111_v8  ;;  %v1119_v28 = vpack.c.bf16 %v318_v27, %v317_v26  ;;  %v320_v30 = vld [vmem:[%s1499_s7 + $0x18] sm:$0xff]  ;;  %v977_v1 = vld [vmem:[%s1497_s5] ss:$0 sm:$0xff]  ;;  %s1207_s5 = smov 32   ;;  %vm750_vm8 = vcmask 523264   ;;  %vm827_vm9 = vcmask 254976  }
  0x12   :  { %1116 = vmatprep.subr.bf16.mxu1 %v1115_v11  ;;  %v1123_v31 = vpack.c.bf16 %v320_v30, %v319_v29  ;;  %v981_v9 = vld [vmem:[%s1500_s8] ss:$0 sm:$0xff]  ;;  %s1208_s26 = smov 64   ;;  %s1209_s12 = smov [#allocation4]   ;;  %vm955_vm10 = vcmask 531456  }
  0x13   :  { %1039 = vmatmul.mubr.msk.f32.vlgmr.msra.gmra.mrb[0].mxu0 %vm78_vm0, %v1341_v12  ;;  %1120 = vmatprep.subr.bf16.mxu0 %v1119_v28  ;;  %s964_s18 = sshll.u32 %s1209_s12, 4  ;;  %s965_s18 = int_to_ptr.vmem [resolvable:$true] %s964_s18 }
  0x14   :  { %1122 = vmatpush3.bf16.msra.mxu0 %v1119_v28  ;;  %p1182_p1 = scmp.lt.s32.totalorder %s965_s18, %s965_s18 }
  0x15   :  { %1118 = vmatpush3.bf16.msra.mxu1 %v1115_v11  ;;  %1124 = vmatprep.subr.bf16.mxu0 %v1123_v31 }
  0x18   :  { %1126 = vmatpush3.bf16.msra.mxu0 %v1123_v31 }
  0x7e   :  { %v163_v13 = vpop.permute.xlu0 %162 }
  0x83   :  { %v165_v14 = vpop.permute.xlu0 %164 }
  0xe6   :  { %v1040_v15 = vpop.f32.mrb[0].mxu0 }
  0xe7   :  { %v151_v16 = vpop.f32.mrb[1].mxu0  ;;  %v169_v18 = vsel %vm78_vm0, %v1040_v15, %v165_v14 }
  0xe8   :  { %v168_v17 = vsel %vm78_vm0, %v151_v16, %v163_v13 }
  0xe9   :  { %1049 = vmatprep.mubr.msk.f32.mxu1 %vm176_vm1, %v168_v17 }
  0xea   :  { %1050 = vmatmul.mubr.msk.f32.vlgmr.msra.gmra.mrb[0].mxu1 %vm176_vm1, %v169_v18 }
  0xeb   :  { %1067 = vmatprep.mubr.msk.f32.mxu1 %vm78_vm0, %v67_v4  ;;  %v978_v4 = vld [vmem:[%s1498_s6] ss:$0 sm:$0xff] }
 0x1bd   :  { %v1051_v20 = vpop.f32.mrb[0].mxu1 }
 0x1be   :  { %v249_v21 = vpop.f32.mrb[1].mxu1  ;;  %v255_v23 = vadd.f32 %v1051_v20, %v974_v19 }
 0x1bf   :  { %v250_v22 = vadd.f32 %v974_v19, %v249_v21 }
 0x1c0   :  { %v259_v25 = vmax.f32 %v255_v23, 0.0 }
 0x1c1   :  { %v258_v24 = vmax.f32 %v250_v22, 0.0 }
 0x1c3   :  { %262 = vrot.lane.b32.xlu1 %v258_v24, %s1202_s25 }
 0x1c7   :  { %264 = vrot.lane.b32.xlu1 %v259_v25, %s1202_s25 }
 0x235   :  { %v263_v32 = vpop.permute.xlu1 %262 }
 0x236   :  { %v268_v33 = vadd.f32 %v263_v32, %v258_v24 }
 0x238   :  { %v279_v35 = vmul.f32 %v268_v33, %v268_v33  ;;  %v270_v37 = vsel %vm176_vm1, %v268_v33, 0.0 }
 0x239   :  { %v265_v34 = vpop.permute.xlu1 %264 }
 0x23a   :  { %v269_v36 = vadd.f32 %v265_v34, %v259_v25  ;;  %v281_v41 = vsel %vm176_vm1, %v279_v35, 0.0 }
 0x23c   :  { %v271_v38 = vsel %vm176_vm1, %v269_v36, 0.0  ;;  %v280_v39 = vmul.f32 %v269_v36, %v269_v36 }
 0x23d   :  { %v272_v40 = vadd.f32 %v271_v38, %v270_v37 }
 0x23e   :  { %v282_v42 = vsel %vm176_vm1, %v280_v39, 0.0 }
 0x23f   :  { %v273_v43 = vrot.slane %v272_v40, 4  ;;  %v283_v44 = vadd.f32 %v282_v42, %v281_v41 }
 0x241   :  { %v274_v45 = vadd.f32 %v273_v43, %v272_v40  ;;  %v284_v46 = vrot.slane %v283_v44, 4 }
 0x243   :  { %v275_v47 = vrot.slane %v274_v45, 2  ;;  %v285_v48 = vadd.f32 %v284_v46, %v283_v44 }
 0x245   :  { %v276_v49 = vadd.f32 %v275_v47, %v274_v45  ;;  %v286_v50 = vrot.slane %v285_v48, 2 }
 0x247   :  { %v277_v51 = vrot.slane %v276_v49, 1  ;;  %v287_v52 = vadd.f32 %v286_v50, %v285_v48 }
 0x249   :  { %v278_v53 = vadd.f32 %v277_v51, %v276_v49  ;;  %v288_v54 = vrot.slane %v287_v52, 1 }
 0x24b   :  { %v289_v55 = vadd.f32 %v288_v54, %v287_v52  ;;  %v290_v56 = vmul.f32 0.0625, %v278_v53 }
 0x24d   :  { %v291_v57 = vmul.f32 0.0625, %v289_v55  ;;  %v292_v58 = vmul.f32 %v290_v56, %v290_v56  ;;  %v296_v62 = vsub.f32 %v269_v36, %v290_v56  ;;  %v295_v63 = vsub.f32 %v268_v33, %v290_v56  ;;  %v984_v56 = vld [vmem:[%s1501_s9] ss:$0 sm:$0xff] }
 0x24f   :  { %v293_v59 = vsub.f32 %v291_v57, %v292_v58 }
 0x251   :  { %v294_v60 = vmax.f32 %v293_v59, 0.0  ;;  %v985_v59 = vld [vmem:[%s1502_s10] ss:$0 sm:$0xff] }
 0x253   :  { %v297_v61 = vadd.f32 1e-05, %v294_v60 }
 0x255   :  { %1163 = vrsqrt.f32 %v297_v61 }
 0x25f   :  { %v1164_v0 = vpop.eup %1163 }
 0x260   :  { %v300_v2 = vmul.f32 %v1164_v0, %v296_v62  ;;  %v299_v3 = vmul.f32 %v1164_v0, %v295_v63  ;;  %v986_v62 = vld [vmem:[%s1503_s11] ss:$0 sm:$0xff]  ;;  %s1522_s11 = sld [smem:[#allocation8_spill]] }
 0x262   :  { %v308_v5 = vmul.f32 %v977_v1, %v300_v2  ;;  %v307_v6 = vmul.f32 %v977_v1, %v299_v3 }
 0x264   :  { %v315_v7 = vadd.f32 %v978_v4, %v307_v6  ;;  %v316_v8 = vadd.f32 %v978_v4, %v308_v5  ;;  %v1203_v5 = vmov 0   ;;  %v987_v6 = vld [vmem:[#allocation2] ss:$0 sm:$0xff] }
 0x265   :  { %1162 = vset.pattern.permute.xlu1 %v1203_v5  ;;  %1161 = vset.pattern.permute.xlu0 %v1203_v5 }
 0x266   :  { %1060 = vmatprep.mubr.msk.f32.mxu0 %vm176_vm1, %v315_v7 }
 0x267   :  { %1061 = vmatmul.mubr.msk.f32.vlgmr.msra.gmra.mrb[2].mxu0 %vm176_vm1, %v316_v8 }
 0x33a   :  { %v1062_v10 = vpop.f32.mrb[2].mxu0 }
 0x33b   :  { %v489_v11 = vadd.f32 %v1062_v10, %v981_v9  ;;  %v396_v13 = vpop.f32.mrb[3].mxu0 }
 0x33c   :  { %v1127_v14 = vpack.c.bf16 %v1062_v10, %v396_v13  ;;  %v488_v15 = vadd.f32 %v981_v9, %v396_v13 }
 0x33d   :  { %v491_v16 = vmax.f32 %v489_v11, 0.0 }
 0x33e   :  { %v490_v17 = vmax.f32 %v488_v15, 0.0  ;;  %1128 = vmatprep.subr.bf16.mxu1 %v1127_v14 }
 0x33f   :  { %496 = vrot.lane.b32.xlu1 %v491_v16, %s1202_s25  ;;  %1130 = vmatpush3.bf16.msra.mxu1 %v1127_v14 }
 0x340   :  { %494 = vrot.lane.b32.xlu0 %v490_v17, %s1202_s25 }
 0x342   :  { %1068 = vmatmul.mubr.msk.f32.vlgmr.msra.gmra.mrb[2].mxu1 %vm78_vm0, %v1341_v12 }
 0x3b1   :  { %v497_v23 = vpop.permute.xlu1 %496 }
 0x3b2   :  { %v495_v25 = vpop.permute.xlu0 %494 }
 0x415   :  { %v1069_v18 = vpop.f32.mrb[2].mxu1 }
 0x416   :  { %v483_v19 = vadd.f32 %v1069_v18, %v981_v9  ;;  %v477_v20 = vpop.f32.mrb[3].mxu1  ;;  %v671_v18 = vlaneseq }
 0x417   :  { %v478_v21 = vadd.f32 %v981_v9, %v477_v20 }
 0x418   :  { %v487_v22 = vmax.f32 %v483_v19, 0.0  ;;  %v672_v19 = vshrl.u32 %v671_v18, 7 }
 0x419   :  { %v486_v24 = vmax.f32 %v478_v21, 0.0  ;;  %v549_v21 = vld [vmem:[%s1522_s11] sm:$0x3] }
 0x41a   :  { %v501_v26 = vadd.f32 %v497_v23, %v487_v22  ;;  %v673_v20 = vsub.s32 0, %v672_v19 }
 0x41b   :  { %v500_v27 = vadd.f32 %v495_v25, %v486_v24  ;;  %v684_v25 = vsub.s32 1, %v672_v19  ;;  %v991_v19 = vld [vmem:[%s1506_s14] ss:$0 sm:$0xff] }
 0x41c   :  { %v503_v28 = vsel %vm176_vm1, %v501_v26, 0.0  ;;  %v512_v29 = vmul.f32 %v501_v26, %v501_v26  ;;  %v674_v24 = vrot.slane %v549_v21, %v673_v20 }
 0x41d   :  { %v502_v30 = vsel %vm176_vm1, %v500_v27, 0.0  ;;  %v511_v31 = vmul.f32 %v500_v27, %v500_v27 }
 0x41e   :  { %v514_v32 = vsel %vm176_vm1, %v512_v29, 0.0  ;;  %v504_v33 = vadd.f32 %v503_v28, %v502_v30  ;;  %v685_v28 = vrot.slane %v549_v21, %v684_v25 }
 0x41f   :  { %v513_v12 = vsel %vm176_vm1, %v511_v31, 0.0 }
 0x420   :  { %v505_v34 = vrot.slane %v504_v33, 4  ;;  %v515_v35 = vadd.f32 %v514_v32, %v513_v12 }
 0x422   :  { %v506_v36 = vadd.f32 %v505_v34, %v504_v33  ;;  %v516_v37 = vrot.slane %v515_v35, 4 }
 0x424   :  { %v507_v38 = vrot.slane %v506_v36, 2  ;;  %v517_v39 = vadd.f32 %v516_v37, %v515_v35 }
 0x426   :  { %v508_v40 = vadd.f32 %v507_v38, %v506_v36  ;;  %v518_v41 = vrot.slane %v517_v39, 2 }
 0x428   :  { %v509_v42 = vrot.slane %v508_v40, 1  ;;  %v519_v43 = vadd.f32 %v518_v41, %v517_v39 }
 0x42a   :  { %v510_v44 = vadd.f32 %v509_v42, %v508_v40  ;;  %v520_v45 = vrot.slane %v519_v43, 1 }
 0x42c   :  { %v521_v46 = vadd.f32 %v520_v45, %v519_v43  ;;  %v522_v47 = vmul.f32 0.0625, %v510_v44 }
 0x42e   :  { %v523_v48 = vmul.f32 0.0625, %v521_v46  ;;  %v524_v49 = vmul.f32 %v522_v47, %v522_v47  ;;  %v527_v50 = vsub.f32 %v500_v27, %v522_v47  ;;  %v528_v51 = vsub.f32 %v501_v26, %v522_v47 }
 0x42f   :  { %v1204_v26 = vmov 0.0|0.0   ;;  %v1206_v27 = vmov 0.0  }
 0x430   :  { %v525_v52 = vsub.f32 %v523_v48, %v524_v49  ;;  %1131 = vmatprep.subr.bf16.mxu0 %v1204_v26  ;;  %1134 = vmatprep.subr.bf16.mxu1 %v1204_v26 }
 0x431   :  { %1074 = vmatprep.mubr.msk.f32.mxu0 %vm1205_vm2, %v1206_v27  ;;  %1093 = vmatprep.mubr.msk.f32.mxu1 %vm1205_vm2, %v1206_v27 }
 0x432   :  { %v526_v53 = vmax.f32 %v525_v52, 0.0  ;;  %v737_v52 = vld [vmem:[%s1505_s13 + $0x10] sm:$0xff] }
 0x434   :  { %v529_v54 = vadd.f32 1e-05, %v526_v53 }
 0x436   :  { %1165 = vrsqrt.f32 %v529_v54 }
 0x440   :  { %v1166_v55 = vpop.eup %1165 }
 0x441   :  { %v531_v57 = vmul.f32 %v1166_v55, %v527_v50  ;;  %v532_v58 = vmul.f32 %v1166_v55, %v528_v51  ;;  %v735_v50 = vld [vmem:[%s1505_s13] sm:$0xff]  ;;  %v736_v51 = vld [vmem:[%s1505_s13 + $0x8] sm:$0xff]  ;;  %v738_v55 = vld [vmem:[%s1505_s13 + $0x18] sm:$0xff] }
 0x442   :  { %v1135_v54 = vpack.c.bf16 %v736_v51, %v735_v50  ;;  %v995_v51 = vld [vmem:[#allocation3] ss:$0 sm:$0xff] }
 0x443   :  { %v539_v60 = vmul.f32 %v984_v56, %v531_v57  ;;  %v540_v61 = vmul.f32 %v984_v56, %v532_v58  ;;  %v1138_v58 = vpack.c.bf16 %v738_v55, %v737_v52 }
 0x444   :  { %1136 = vmatpush3.bf16.msra.mxu1 %v1135_v54 }
 0x445   :  { %v1399_v63 = vadd.f32 %v985_v59, %v540_v61  ;;  %v1401_v0 = vadd.f32 %v985_v59, %v539_v60  ;;  %1137 = vmatprep.subr.bf16.mxu1 %v1204_v26  ;;  %v739_v59 = vld [vmem:[%s1505_s13 + $0x20] sm:$0xff]  ;;  %v740_v60 = vld [vmem:[%s1505_s13 + $0x28] sm:$0xff] }
 0x447   :  { %v558_v1 = vmul.f32 %v986_v62, %v1399_v63  ;;  %v557_v2 = vmul.f32 %v986_v62, %v1401_v0 }
 0x448   :  { %1139 = vmatpush3.bf16.msra.mxu1 %v1138_v58 }
 0x449   :  { %v562_v3 = vsel %vm176_vm1, %v558_v1, 0.0  ;;  %v559_v4 = vsel %vm176_vm1, %v557_v2, 0.0  ;;  %1140 = vmatprep.subr.bf16.mxu1 %v1204_v26  ;;  %v741_v1 = vld [vmem:[%s1505_s13 + $0x30] sm:$0xff]  ;;  %v742_v2 = vld [vmem:[%s1505_s13 + $0x38] sm:$0xff] }
 0x44a   :  { %563 = vadd.xlane.f32.xlu1 %v562_v3  ;;  %560 = vadd.xlane.f32.xlu0 %v559_v4 }
 0x4d7   :  { %v564_v7 = vpop.xlane.xlu1 %563  ;;  %v561_v8 = vpop.xlane.xlu0 %560 }
 0x4d8   :  { %v573_v9 = vadd.f32 %v987_v6, %v564_v7  ;;  %v572_v10 = vadd.f32 %v987_v6, %v561_v8  ;;  %v1144_v6 = vpack.c.bf16 %v742_v2, %v741_v1 }
 0x4da   :  { %v989_v11 = vmul.f32 -1.442695, %v573_v9  ;;  %v988_v13 = vmul.f32 -1.442695, %v572_v10 }
 0x4dc   :  { %1167 = vpow2.f32 %v989_v11 }
 0x4dd   :  { %1169 = vpow2.f32 %v988_v13  ;;  %v866_v13 = vld [vmem:[%s1509_s17] sm:$0xff] }
 0x4e6   :  { %v1168_v14 = vpop.eup %1167 }
 0x4e7   :  { %v1170_v15 = vpop.eup %1169  ;;  %v581_v16 = vadd.f32 1.0, %v1168_v14  ;;  %v867_v14 = vld [vmem:[%s1509_s17 + $0x8] sm:$0xff] }
 0x4e8   :  { %v580_v17 = vadd.f32 1.0, %v1170_v15  ;;  %v1147_v15 = vpack.c.bf16 %v867_v14, %v866_v13 }
 0x4e9   :  { %1171 = vrcp.f32 %v581_v16  ;;  %v868_v16 = vld [vmem:[%s1509_s17 + $0x10] sm:$0xff] }
 0x4ea   :  { %1173 = vrcp.f32 %v580_v17  ;;  %v869_v17 = vld [vmem:[%s1509_s17 + $0x18] sm:$0xff] }
 0x4eb   :  { %v1150_v18 = vpack.c.bf16 %v869_v17, %v868_v16 }
 0x4f3   :  { %v1172_v22 = vpop.eup %1171 }
 0x4f4   :  { %v1174_v23 = vpop.eup %1173  ;;  %593 = vperm.xlu1 %1162, %v1172_v22  }
 0x4f5   :  { %588 = vperm.xlu0 %1161, %v1174_v23  }
 0x4f8   :  { %676 = vbcast.lane.b32.xlu1 %v674_v24, 256 }
 0x4fc   :  { %680 = vbcast.lane.b32.xlu1 %v674_v24, 264 }
 0x500   :  { %687 = vbcast.lane.b32.xlu1 %v685_v28, 256 }
 0x504   :  { %691 = vbcast.lane.b32.xlu1 %v685_v28, 264 }
 0x573   :  { %v594_v29 = vpop.permute.xlu1 %593 }
 0x574   :  { %v597_v30 = vmul.f32 %v594_v29, %v1399_v63  ;;  %v589_v31 = vpop.permute.xlu0 %588 }
 0x575   :  { %v596_v32 = vmul.f32 %v589_v31, %v1401_v0 }
 0x577   :  { %v1132_v33 = vpack.c.bf16 %v597_v30, %v596_v32  ;;  %v677_v12 = vpop.permute.xlu1 %676 }
 0x578   :  { %vm693_vm3 = vcmp.gt.f32.partialorder %v677_v12, 0.5 }
 0x579   :  { %1133 = vmatpush3.bf16.msra.mxu0 %v1132_v33  ;;  %v705_v34 = vsel %vm693_vm3, %v1401_v0, -1e+30 }
 0x57a   :  { %1146 = vmatprep.subr.bf16.mxu0 %v1204_v26  ;;  %v709_v37 = vsel %vm176_vm1, %v705_v34, -inf }
 0x57b   :  { %v681_v35 = vpop.permute.xlu1 %680 }
 0x57c   :  { %vm694_vm4 = vcmp.gt.f32.partialorder %v681_v35, 0.5  ;;  %1075 = vmatmul.mubr.msk.f32.vlgmr.msra.gmra.mrb[4].mxu0 %vm78_vm0, %v549_v21 }
 0x57d   :  { %v706_v36 = vsel %vm694_vm4, %v1399_v63, -1e+30  ;;  %1104 = vmatprep.mubr.msk.f32.mxu0 %vm1205_vm2, %v1206_v27  ;;  %1148 = vmatpush3.bf16.msra.mxu0 %v1147_v15 }
 0x57e   :  { %v710_v38 = vsel %vm176_vm1, %v706_v36, -inf  ;;  %1149 = vmatprep.subr.bf16.mxu0 %v1204_v26 }
 0x57f   :  { %v711_v39 = vmax.f32 %v709_v37, %v710_v38  ;;  %v688_v40 = vpop.permute.xlu1 %687 }
 0x580   :  { %vm695_vm5 = vcmp.gt.f32.partialorder %v688_v40, 0.5 }
 0x581   :  { %v712_v41 = vrot.slane %v711_v39, 4  ;;  %v707_v43 = vsel %vm695_vm5, %v1401_v0, -1e+30  ;;  %v1141_v0 = vpack.c.bf16 %v740_v60, %v739_v59  ;;  %1151 = vmatpush3.bf16.msra.mxu0 %v1150_v18 }
 0x582   :  { %v718_v46 = vsel %vm176_vm1, %v707_v43, -inf }
 0x583   :  { %v713_v42 = vmax.f32 %v711_v39, %v712_v41  ;;  %v692_v44 = vpop.permute.xlu1 %691  ;;  %1142 = vmatpush3.bf16.msra.mxu1 %v1141_v0 }
 0x584   :  { %vm696_vm6 = vcmp.gt.f32.partialorder %v692_v44, 0.5  ;;  %1143 = vmatprep.subr.bf16.mxu1 %v1204_v26 }
 0x585   :  { %v708_v45 = vsel %vm696_vm6, %v1399_v63, -1e+30  ;;  %v714_v48 = vrot.slane %v713_v42, 2 }
 0x586   :  { %v719_v47 = vsel %vm176_vm1, %v708_v45, -inf }
 0x587   :  { %v720_v49 = vmax.f32 %v718_v46, %v719_v47  ;;  %v715_v56 = vmax.f32 %v713_v42, %v714_v48  ;;  %1145 = vmatpush3.bf16.msra.mxu1 %v1144_v6  ;;  %v993_v46 = vld [vmem:[%s1507_s15] ss:$0 sm:$0xff]  ;;  %s1177_s15 = scalar_lea.vmem %s965_s18, 32 }
 0x588   :  { %v994_v48 = vld [vmem:[%s1508_s16] ss:$0 sm:$0xff]  ;;  %p1178_p0 = scmp.ne.s32.totalorder %s965_s18, %s1177_s15  ;;  %p1183_p2 = scmp.lt.s32.totalorder %s1177_s15, %s1177_s15 }
 0x589   :  { %v721_v53 = vrot.slane %v720_v49, 4  ;;  %v716_v63 = vrot.slane %v715_v56, 1 }
 0x58a   :  { %p1184_p3 = por %p1183_p2, %p1182_p1 }
 0x58b   :  { %v722_v57 = vmax.f32 %v720_v49, %v721_v53  ;;  %v717_v4 = vmax.f32 %v715_v56, %v716_v63 }
 0x58c   :  { %p1185_p4 = pnand %p1184_p3, %p1178_p0 }
 0x58d   :  { %v723_v61 = vrot.slane %v722_v57, 2 }
 0x58f   :  { %v724_v62 = vmax.f32 %v722_v57, %v723_v61 }
 0x591   :  { %v725_v3 = vrot.slane %v724_v62, 1 }
 0x593   :  { %v726_v5 = vmax.f32 %v724_v62, %v725_v3 }
 0x595   :  { %v730_v7 = vsel %vm729_vm7, %v726_v5, %v717_v4 }
 0x596   :  { %731 = vrot.lane.b32.xlu1 %v730_v7, %s1207_s5 }
 0x608   :  { %v732_v8 = vpop.permute.xlu1 %731 }
 0x64f   :  { %v667_v9 = vpop.f32.mrb[4].mxu0 }
 0x650   :  { %v734_v10 = vsel %vm176_vm1, %v667_v9, %v732_v8  ;;  %v1076_v11 = vpop.f32.mrb[5].mxu0 }
 0x651   :  { %1094 = vmatmul.mubr.msk.f32.vlgmr.msra.gmra.mrb[4].mxu1 %vm750_vm8, %v734_v10 }
 0x724   :  { %v820_v20 = vpop.f32.mrb[4].mxu1 }
 0x725   :  { %v821_v21 = vadd.f32 %v991_v19, %v820_v20  ;;  %v1095_v22 = vpop.f32.mrb[5].mxu1 }
 0x727   :  { %v824_v23 = vmax.f32 %v821_v21, 0.0 }
 0x729   :  { %v828_v24 = vsel %vm827_vm9, %v824_v23, 0.0  ;;  %v835_v25 = vmul.f32 %v824_v23, %v824_v23 }
 0x72a   :  { %v829_v26 = vrot.slane %v828_v24, 4 }
 0x72b   :  { %v836_v27 = vsel %vm827_vm9, %v835_v25, 0.0 }
 0x72c   :  { %v830_v28 = vadd.f32 %v829_v26, %v828_v24  ;;  %v837_v29 = vrot.slane %v836_v27, 4 }
 0x72e   :  { %v831_v30 = vrot.slane %v830_v28, 2  ;;  %v838_v31 = vadd.f32 %v837_v29, %v836_v27 }
 0x730   :  { %v832_v32 = vadd.f32 %v831_v30, %v830_v28  ;;  %v839_v33 = vrot.slane %v838_v31, 2 }
 0x732   :  { %v833_v12 = vrot.slane %v832_v32, 1  ;;  %v840_v34 = vadd.f32 %v839_v33, %v838_v31 }
 0x734   :  { %v834_v35 = vadd.f32 %v833_v12, %v832_v32  ;;  %v841_v36 = vrot.slane %v840_v34, 1 }
 0x736   :  { %v842_v37 = vadd.f32 %v841_v36, %v840_v34  ;;  %v843_v38 = vmul.f32 0.5, %v834_v35 }
 0x738   :  { %v844_v39 = vmul.f32 0.5, %v842_v37  ;;  %v845_v40 = vmul.f32 %v843_v38, %v843_v38  ;;  %v848_v44 = vsub.f32 %v824_v23, %v843_v38 }
 0x73a   :  { %v846_v41 = vsub.f32 %v844_v39, %v845_v40 }
 0x73c   :  { %v847_v42 = vmax.f32 %v846_v41, 0.0 }
 0x73e   :  { %v849_v43 = vadd.f32 1e-05, %v847_v42 }
 0x740   :  { %1175 = vrsqrt.f32 %v849_v43 }
 0x74a   :  { %v1176_v45 = vpop.eup %1175 }
 0x74b   :  { %v851_v47 = vmul.f32 %v1176_v45, %v848_v44 }
 0x74d   :  { %v858_v49 = vmul.f32 %v993_v46, %v851_v47 }
 0x74f   :  { %v865_v50 = vadd.f32 %v994_v48, %v858_v49 }
 0x751   :  { %1105 = vmatmul.mubr.msk.f32.vlgmr.msra.gmra.mrb[6].mxu0 %vm176_vm1, %v865_v50 }
 0x824   :  { %v946_v52 = vpop.f32.mrb[6].mxu0 }
 0x825   :  { %v947_v53 = vadd.f32 %v995_v51, %v946_v52  ;;  %v1106_v54 = vpop.f32.mrb[7].mxu0 }
 0x827   :  { %951 = vrot.lane.b32.xlu1 %v947_v53, %s1208_s26 }
 0x899   :  { %v952_v55 = vpop.permute.xlu1 %951 }
 0x89a   :  { %v954_v56 = vsel %vm750_vm8, %v734_v10, %v952_v55 }
 0x89b   :  { %v956_v57 = vsel %vm955_vm10, %v954_v56, 0.0 }
 0x89c   :  { %957 = vst [vmem:[#allocation4] sm:$0x3] %v956_v57 }
 0x89d   :  { %1188 = shalt.err (!%p1185_p4)
}
 0x89e   :  { %s1189_s27 = scalar_lea.hbm %s1510_s19, 32 }
 0x89f   :  { %p1190_p5 = scmp.ne.s32.totalorder %s1510_s19, %s1189_s27  ;;  %p1193_p6 = scmp.lt.u32.totalorder %s1189_s27, %s1510_s19 }
 0x8a1   :  { %p1195_p7 = pnand %p1193_p6, %p1190_p5 }
 0x8a3   :  { %1198 = shalt.err (!%p1195_p7)
}
 0x8a4   :  { %967 = dma.vmem_to_hbm [thread:$0]  %s965_s18, 32, %s1510_s19, [#allocation5]  }
 0x8a5   :  { %1199 = dma.done.wait [#allocation5], 32  }
 0x8a6   :  { %1200 = vsyncadd [#allocation5], 4294967264 }
 0x8a7   :  { %971 = vsyncpa [#allocation5], 1 }

</bundles_post_ra>
